<compile_context>
chip_gen: v7x
topology: tpu7x:2x2x1
jax: 0.10.0
libtpu: 0.0.40
codegen_flags: <defaults>
</compile_context>

<pallas_src>
import functools

import jax
import jax.numpy as jnp
from jax.experimental import pallas as pl
from jax.experimental.pallas import tpu as pltpu


def _fused_gcn_kernel(*refs, num_layers, hidden, out_cols):
    """Fused multi-layer GCN forward; all operands resident in VMEM.

    refs = (adj, x0, W_0..W_{L-1}, b_0..b_{L-1}, out)
      adj : [N, N]         normalized adjacency (compute dtype, bf16 by default)
      x0  : [N, in_ch]     embedding weights    (compute dtype)
      W_l : [in_l, H]      layer weight         (compute dtype)
      b_l : [1, H]         layer bias           (f32)
      out : [N, out_cols]  stacked pre-ReLU activations, lane-padded (f32)
    """
    adj_ref, x_ref = refs[0], refs[1]
    w_refs = refs[2:2 + num_layers]
    b_refs = refs[2 + num_layers:2 + 2 * num_layers]
    out_ref = refs[2 + 2 * num_layers]

    cdtype = adj_ref.dtype
    adj = adj_ref[...]
    x = x_ref[...]                       # compute dtype, [N, in_ch]
    h = None
    hs = []
    for l in range(num_layers):          # static unroll over layers
        if l > 0:
            # ReLU/bias kept in f32 (v5e VPU has no bf16 path); eval-mode
            # dropout is identity.  Cast back to compute dtype only at the MXU.
            x = jnp.maximum(h, 0.0).astype(cdtype)          # [N, H]
        # De-padded: contraction width is in_ch for layer 0, hidden afterwards;
        # the dominant N x N matmul is always width `hidden`.
        xw = jnp.dot(x, w_refs[l][...], preferred_element_type=jnp.float32)
        h = (
            jnp.dot(adj, xw.astype(cdtype), preferred_element_type=jnp.float32)
            + b_refs[l][...]
        )                                                    # [N, H] f32, pre-ReLU
        hs.append(h)

    # Single lane-dense store: concatenate the L*H pre-ReLU columns, zero-pad to
    # out_cols (multiple of 128), and write the whole slab with one unmasked vst.
    slab = jnp.concatenate(hs, axis=-1)                      # [N, L*H] f32
    pad = out_cols - slab.shape[-1]
    if pad > 0:
        slab = jnp.concatenate(
            [slab, jnp.zeros((slab.shape[0], pad), slab.dtype)], axis=-1)
    out_ref[...] = slab


def _nbytes(a):
    return a.size * a.dtype.itemsize


def autolink_forward(adj_hat, emb_weight, weights, biases, *,
                     compute_dtype=jnp.bfloat16):
    """Reproduces AutoLink_l3TableSeal.forward (eval mode: dropout = identity).

    Returns [num_node, num_layers, hidden_channels] of pre-ReLU layer outputs.
    compute_dtype controls the MXU operand dtype (bf16 default; f32 available
    for tight numerical checks).  Accumulation / bias / ReLU are always f32.
    """
    num_layers = len(weights)
    n, in_channels = emb_weight.shape
    hidden = weights[0].shape[1]
    lh = num_layers * hidden
    out_cols = ((lh + 127) // 128) * 128        # lane-dense output slab width

    adj = adj_hat.astype(compute_dtype)
    x0 = emb_weight.astype(compute_dtype)
    ws = [w.astype(compute_dtype) for w in weights]
    bs = [b.reshape(1, hidden).astype(jnp.float32) for b in biases]

    kernel = functools.partial(
        _fused_gcn_kernel, num_layers=num_layers, hidden=hidden, out_cols=out_cols)

    # Advisory cost estimate: per-layer x@W plus the dominant N*N*H propagation.
    flops = (2 * n * in_channels * hidden
             + 2 * (num_layers - 1) * n * hidden * hidden
             + 2 * num_layers * n * n * hidden)
    in_bytes = (_nbytes(adj) + _nbytes(x0)
                + sum(_nbytes(w) for w in ws) + sum(_nbytes(b) for b in bs))
    out_bytes = n * out_cols * 4
    cost = pl.CostEstimate(flops=flops, transcendentals=0,
                           bytes_accessed=in_bytes + out_bytes)

    # Everything is VMEM-resident (grid-less call); leave head-room above the raw
    # footprint but never request more than the smallest chip's VMEM (v7x: 64 MiB).
    vmem_limit = int(min(64 * 1024 * 1024,
                         max(32 * 1024 * 1024,
                             2 * (in_bytes + out_bytes) + (2 << 20))))

    vmem = pl.BlockSpec(memory_space=pltpu.MemorySpace.VMEM)
    out_slab = pl.pallas_call(
        kernel,
        out_shape=jax.ShapeDtypeStruct((n, out_cols), jnp.float32),
        in_specs=[vmem] * (2 + 2 * num_layers),
        out_specs=vmem,
        compiler_params=pltpu.CompilerParams(vmem_limit_bytes=vmem_limit),
        cost_estimate=cost,
    )(adj, x0, *ws, *bs)

    # Drop the lane padding and expose the (N, L, H) layout the module returns.
    return out_slab[:, :lh].reshape(n, num_layers, hidden)


def normalize_adjacency(adj):
    """GCN-style symmetric normalization with self loops: D^-1/2 (A + I) D^-1/2."""
    n = adj.shape[0]
    a = adj + jnp.eye(n, dtype=adj.dtype)
    deg = jnp.sum(a, axis=1)
    d_inv_sqrt = jnp.where(deg > 0, 1.0 / jnp.sqrt(deg), 0.0)
    return a * d_inv_sqrt[:, None] * d_inv_sqrt[None, :]


def init_params(key, num_node, in_channels, hidden_channels, num_layers):
    """Deterministic parameter init (Glorot-uniform, like reset_parameters)."""
    keys = jax.random.split(key, num_layers + 1)

    def glorot(k, fan_in, fan_out):
        limit = jnp.sqrt(6.0 / (fan_in + fan_out))
        return jax.random.uniform(
            k, (fan_in, fan_out), jnp.float32, minval=-limit, maxval=limit)

    emb_weight = glorot(keys[0], num_node, in_channels)   # xavier_uniform_ on embedding
    weights, biases = [], []
    for l in range(num_layers):
        c_in = in_channels if l == 0 else hidden_channels
        weights.append(glorot(keys[l + 1], c_in, hidden_channels))
        biases.append(jnp.zeros((hidden_channels,), jnp.float32))
    return emb_weight, weights, biases


def reference_forward(adj_hat, emb_weight, weights, biases):
    """Pure-JAX (f32) reference for correctness checking."""
    x = emb_weight
    hidden = []
    for l, (w, b) in enumerate(zip(weights, biases)):
        xin = jnp.maximum(x, 0.0) if l > 0 else x
        h = adj_hat @ (xin @ w) + b[None, :]
        hidden.append(h)
        x = h
    return jnp.stack(hidden, axis=1)


if __name__ == "__main__":
    # Small shapes consistent with the module: num_node=16, in_channels=8,
    # hidden_channels=32, num_layers=3, gnn_type='GCN', dropout (eval -> no-op).
    num_node, in_channels, hidden_channels, num_layers = 16, 8, 32, 3

    key = jax.random.PRNGKey(0)
    k_adj, k_par = jax.random.split(key)

    # Random symmetric binary adjacency (no self loops); normalized like GCNConv.
    raw = jax.random.bernoulli(k_adj, p=0.3, shape=(num_node, num_node))
    adj = jnp.triu(raw.astype(jnp.float32), k=1)
    adj = adj + adj.T
    adj_hat = normalize_adjacency(adj)

    emb_weight, weights, biases = init_params(
        k_par, num_node, in_channels, hidden_channels, num_layers)

    # Default (bf16 MXU operands, f32 accumulation) path.
    out_bf16 = autolink_forward(adj_hat, emb_weight, weights, biases)
    out_bf16 = jax.block_until_ready(out_bf16)

    # f32 compute path for a tight numerical check.
    out_f32 = autolink_forward(adj_hat, emb_weight, weights, biases,
                               compute_dtype=jnp.float32)
    out_f32 = jax.block_until_ready(out_f32)

    ref = reference_forward(adj_hat, emb_weight, weights, biases)
    assert out_bf16.shape == (num_node, num_layers, hidden_channels), out_bf16.shape
    assert jnp.allclose(out_f32, ref, atol=1e-5, rtol=1e-5), float(
        jnp.max(jnp.abs(out_f32 - ref)))
    assert jnp.allclose(out_bf16, ref, atol=5e-2, rtol=5e-2), float(
        jnp.max(jnp.abs(out_bf16 - ref)))
    # TODO(synk): F.dropout with training=True (stochastic) not modeled; forward
    # here follows eval-mode semantics (dropout = identity).
    print("KERNEL_OK")
</pallas_src>

<mosaic_0001>
module attributes {stable_mosaic.version = 11 : i64} {
  func.func @_fused_gcn_kernel(%arg0: memref<16x16xbf16, #tpu.memory_space<vmem>>, %arg1: memref<16x8xbf16, #tpu.memory_space<vmem>>, %arg2: memref<8x32xbf16, #tpu.memory_space<vmem>>, %arg3: memref<32x32xbf16, #tpu.memory_space<vmem>>, %arg4: memref<32x32xbf16, #tpu.memory_space<vmem>>, %arg5: memref<1x32xf32, #tpu.memory_space<vmem>>, %arg6: memref<1x32xf32, #tpu.memory_space<vmem>>, %arg7: memref<1x32xf32, #tpu.memory_space<vmem>>, %arg8: memref<16x128xf32, #tpu.memory_space<vmem>>) attributes {dimension_semantics = [], scalar_prefetch = 0 : i64, scratch_operands = 0 : i64, tpu.core_type = #tpu.core_type<tc>} {
    %c0 = arith.constant 0 : index
    %c0_0 = arith.constant 0 : index
    %0 = vector.load %arg0[%c0, %c0_0] : memref<16x16xbf16, #tpu.memory_space<vmem>>, vector<16x16xbf16>
    %c0_1 = arith.constant 0 : index
    %c0_2 = arith.constant 0 : index
    %1 = vector.load %arg1[%c0_1, %c0_2] : memref<16x8xbf16, #tpu.memory_space<vmem>>, vector<16x8xbf16>
    %c0_3 = arith.constant 0 : index
    %c0_4 = arith.constant 0 : index
    %2 = vector.load %arg2[%c0_3, %c0_4] : memref<8x32xbf16, #tpu.memory_space<vmem>>, vector<8x32xbf16>
    %cst = arith.constant dense<0.000000e+00> : vector<16x32xf32>
    %3 = tpu.matmul %1, %2, %cst {dimension_numbers = #tpu.dot_dimension_numbers<[1], [0], [0], [1], [0, 0, 1, 1], [], []>} : vector<16x8xbf16>, vector<8x32xbf16>, vector<16x32xf32> -> vector<16x32xf32>
    %4 = arith.truncf %3 : vector<16x32xf32> to vector<16x32xbf16>
    %cst_5 = arith.constant dense<0.000000e+00> : vector<16x32xf32>
    %5 = tpu.matmul %0, %4, %cst_5 {dimension_numbers = #tpu.dot_dimension_numbers<[1], [0], [0], [1], [0, 0, 1, 1], [], []>} : vector<16x16xbf16>, vector<16x32xbf16>, vector<16x32xf32> -> vector<16x32xf32>
    %c0_6 = arith.constant 0 : index
    %c0_7 = arith.constant 0 : index
    %6 = vector.load %arg5[%c0_6, %c0_7] : memref<1x32xf32, #tpu.memory_space<vmem>>, vector<1x32xf32>
    %7 = vector.broadcast %6 : vector<1x32xf32> to vector<16x32xf32>
    %8 = arith.addf %5, %7 : vector<16x32xf32>
    %cst_8 = arith.constant 0.000000e+00 : f32
    %9 = vector.broadcast %cst_8 : f32 to vector<16x32xf32>
    %10 = arith.maximumf %8, %9 : vector<16x32xf32>
    %11 = arith.truncf %10 : vector<16x32xf32> to vector<16x32xbf16>
    %c0_9 = arith.constant 0 : index
    %c0_10 = arith.constant 0 : index
    %12 = vector.load %arg3[%c0_9, %c0_10] : memref<32x32xbf16, #tpu.memory_space<vmem>>, vector<32x32xbf16>
    %cst_11 = arith.constant dense<0.000000e+00> : vector<16x32xf32>
    %13 = tpu.matmul %11, %12, %cst_11 {dimension_numbers = #tpu.dot_dimension_numbers<[1], [0], [0], [1], [0, 0, 1, 1], [], []>} : vector<16x32xbf16>, vector<32x32xbf16>, vector<16x32xf32> -> vector<16x32xf32>
    %14 = arith.truncf %13 : vector<16x32xf32> to vector<16x32xbf16>
    %cst_12 = arith.constant dense<0.000000e+00> : vector<16x32xf32>
    %15 = tpu.matmul %0, %14, %cst_12 {dimension_numbers = #tpu.dot_dimension_numbers<[1], [0], [0], [1], [0, 0, 1, 1], [], []>} : vector<16x16xbf16>, vector<16x32xbf16>, vector<16x32xf32> -> vector<16x32xf32>
    %c0_13 = arith.constant 0 : index
    %c0_14 = arith.constant 0 : index
    %16 = vector.load %arg6[%c0_13, %c0_14] : memref<1x32xf32, #tpu.memory_space<vmem>>, vector<1x32xf32>
    %17 = vector.broadcast %16 : vector<1x32xf32> to vector<16x32xf32>
    %18 = arith.addf %15, %17 : vector<16x32xf32>
    %cst_15 = arith.constant 0.000000e+00 : f32
    %19 = vector.broadcast %cst_15 : f32 to vector<16x32xf32>
    %20 = arith.maximumf %18, %19 : vector<16x32xf32>
    %21 = arith.truncf %20 : vector<16x32xf32> to vector<16x32xbf16>
    %c0_16 = arith.constant 0 : index
    %c0_17 = arith.constant 0 : index
    %22 = vector.load %arg4[%c0_16, %c0_17] : memref<32x32xbf16, #tpu.memory_space<vmem>>, vector<32x32xbf16>
    %cst_18 = arith.constant dense<0.000000e+00> : vector<16x32xf32>
    %23 = tpu.matmul %21, %22, %cst_18 {dimension_numbers = #tpu.dot_dimension_numbers<[1], [0], [0], [1], [0, 0, 1, 1], [], []>} : vector<16x32xbf16>, vector<32x32xbf16>, vector<16x32xf32> -> vector<16x32xf32>
    %24 = arith.truncf %23 : vector<16x32xf32> to vector<16x32xbf16>
    %cst_19 = arith.constant dense<0.000000e+00> : vector<16x32xf32>
    %25 = tpu.matmul %0, %24, %cst_19 {dimension_numbers = #tpu.dot_dimension_numbers<[1], [0], [0], [1], [0, 0, 1, 1], [], []>} : vector<16x16xbf16>, vector<16x32xbf16>, vector<16x32xf32> -> vector<16x32xf32>
    %c0_20 = arith.constant 0 : index
    %c0_21 = arith.constant 0 : index
    %26 = vector.load %arg7[%c0_20, %c0_21] : memref<1x32xf32, #tpu.memory_space<vmem>>, vector<1x32xf32>
    %27 = vector.broadcast %26 : vector<1x32xf32> to vector<16x32xf32>
    %28 = arith.addf %25, %27 : vector<16x32xf32>
    %29 = tpu.concatenate %8, %18, %28 in 1 : vector<16x32xf32>, vector<16x32xf32>, vector<16x32xf32> -> vector<16x96xf32>
    %cst_22 = arith.constant 0.000000e+00 : f32
    %30 = vector.broadcast %cst_22 : f32 to vector<16x32xf32>
    %31 = tpu.concatenate %29, %30 in 1 : vector<16x96xf32>, vector<16x32xf32> -> vector<16x128xf32>
    %c0_23 = arith.constant 0 : index
    %c0_24 = arith.constant 0 : index
    %32 = vector.load %arg8[%c0_23, %c0_24] : memref<16x128xf32, #tpu.memory_space<vmem>>, vector<16x128xf32>
    tpu.vector_store %arg8[%c0_23, %c0_24], %31 {strides = array<i32>} : memref<16x128xf32, #tpu.memory_space<vmem>>, vector<16x128xf32>,
    return
  }
}

</mosaic_0001>

<bundles_post_ra>
// kernel: tpu_custom_call.1
= control target key start
LH: loop header
LB: loop body
LE: loop exit
PB: predicated region body
PF: predicated region fallthrough
CT: control target
= control target key end

     0   :  { %13 = vsyncpa [#allocation3], 0  ;;  %s737_s0 = inlined_call_operand.hbm [shape: bf16[16,16], index: 0, kind: input, shape index: {}]   ;;  %s738_s1 = inlined_call_operand.vmem [shape: bf16[16,8], index: 1, kind: input, shape index: {}]   ;;  %s739_s2 = inlined_call_operand.vmem [shape: bf16[8,32], index: 2, kind: input, shape index: {}]   ;;  %s740_s3 = inlined_call_operand.vmem [shape: bf16[32,32], index: 3, kind: input, shape index: {}]   ;;  %s741_s4 = inlined_call_operand.hbm [shape: bf16[32,32], index: 4, kind: input, shape index: {}]   ;;  %s742_s5 = inlined_call_operand.vmem [shape: f32[1,32], index: 5, kind: input, shape index: {}]   ;;  %s743_s6 = inlined_call_operand.vmem [shape: f32[1,32], index: 6, kind: input, shape index: {}]   ;;  %s744_s7 = inlined_call_operand.vmem [shape: f32[1,32], index: 7, kind: input, shape index: {}]   ;;  %s745_s8 = inlined_call_operand.hbm [shape: f32[16,128], index: 8, kind: output, shape index: {}]  }
   0x1   :  { %14 = vsyncpa [#allocation6], 0 }
   0x2   :  { %15 = vsyncpa [#allocation4], 0  ;;  %s602_s27 = smov [#allocation2]   ;;  %s530_s9 = scalar_lea.hbm %s737_s0, 128 }
   0x3   :  { %s21_s28 = sshll.u32 %s602_s27, 4  ;;  %p531_p0 = scmp.ne.s32.totalorder %s737_s0, %s530_s9  ;;  %s22_s28 = int_to_ptr.vmem [resolvable:$true] %s21_s28 }
   0x4   :  { %p534_p1 = scmp.lt.u32.totalorder %s530_s9, %s737_s0 }
   0x6   :  { %p536_p2 = pnand %p534_p1, %p531_p0 }
   0x8   :  { %539 = shalt.err (!%p536_p2)
}
   0x9   :  { %s540_s14 = scalar_lea.vmem %s22_s28, 128  ;;  %p545_p4 = scmp.lt.s32.totalorder %s22_s28, %s22_s28 }
   0xa   :  { %p541_p3 = scmp.ne.s32.totalorder %s22_s28, %s540_s14  ;;  %p546_p5 = scmp.lt.s32.totalorder %s540_s14, %s540_s14 }
   0xc   :  { %p547_p6 = por %p546_p5, %p545_p4 }
   0xe   :  { %p548_p7 = pnand %p547_p6, %p541_p3 }
  0x10   :  { %551 = shalt.err (!%p548_p7)
}
  0x11   :  { %s603_s15 = smov 64   ;;  %s604_s16 = smov 4  }
  0x12   :  { %27 = dma.hbm_to_vmem [thread:$0]  %s737_s0, 128, %s22_s28, [#allocation3], %s603_s15, %s603_s15, %s604_s16  }
  0x13   :  { %s605_s19 = smov [#allocation5]   ;;  %s552_s23 = scalar_lea.hbm %s741_s4, 256 }
  0x14   :  { %s39_s20 = sshll.u32 %s605_s19, 4  ;;  %p553_p8 = scmp.ne.s32.totalorder %s741_s4, %s552_s23  ;;  %s40_s20 = int_to_ptr.vmem [resolvable:$true] %s39_s20 }
  0x15   :  { %p556_p9 = scmp.lt.u32.totalorder %s552_s23, %s741_s4 }
  0x17   :  { %p558_p10 = pnand %p556_p9, %p553_p8 }
  0x19   :  { %561 = shalt.err (!%p558_p10)
}
  0x1a   :  { %s562_s29 = scalar_lea.vmem %s40_s20, 256  ;;  %p567_p12 = scmp.lt.s32.totalorder %s40_s20, %s40_s20 }
  0x1b   :  { %p563_p11 = scmp.ne.s32.totalorder %s40_s20, %s562_s29  ;;  %p568_p13 = scmp.lt.s32.totalorder %s562_s29, %s562_s29 }
  0x1d   :  { %p569_p0 = por %p568_p13, %p567_p12 }
  0x1f   :  { %p570_p1 = pnand %p569_p0, %p563_p11 }
  0x21   :  { %573 = shalt.err (!%p570_p1)
}
  0x22   :  { %45 = dma.hbm_to_vmem [thread:$0]  %s741_s4, 256, %s40_s20, [#allocation6], %s603_s15, %s603_s15, %s604_s16  }
  0x23   :  { %596 = dma.done.wait [#allocation3], 128  }
  0x24   :  { %597 = vsyncadd [#allocation3], 4294967168 }
  0x25   :  { %598 = dma.done.wait [#allocation6], 256  }
  0x26   :  { %599 = vsyncadd [#allocation6], 4294967040  ;;  %v606_v0 = vmov 0.0   ;;  %vm607_vm0 = vmmov 0   ;;  %vm73_vm1 = vcmask 1043456   ;;  %vm69_vm2 = vcmask 64512  }
  0x27   :  { %474 = vmatprep.subr.bf16.mxu0 %v606_v0  ;;  %476 = vmatprep.mubr.msk.bf16.mxu0 %vm607_vm0, %v606_v0  ;;  %v63_v1 = vld [vmem:[%s739_s2] sm:$0xf]  ;;  %vm131_vm3 = vcmask 130048   ;;  %v527_v11 = vld [vmem:[%s740_s3 + $0x8] sm:$0xff]   ;;  %vm195_vm4 = vcmask 261120   ;;  %v529_v28 = vld [vmem:[#allocation5 + $0x8] sm:$0xff]  }
  0x28   :  { %480 = vmatprep.subr.bf16.mxu1 %v606_v0  ;;  %482 = vmatprep.mubr.msk.bf16.mxu1 %vm607_vm0, %v606_v0  ;;  %v75_v2 = vsel %vm73_vm1, %v63_v1, 0  ;;  %v524_v3 = vld [vmem:[%s738_s1] sm:$0xff]   ;;  %v528_v27 = vld [vmem:[#allocation5] sm:$0xff]   ;;  %s608_s16 = smov 32   ;;  %vm419_vm5 = vcmask 523264   ;;  %vm422_vm6 = vcmask 785408  }
  0x29   :  { %475 = vmatpush3.bf16.msra.mxu0 %v75_v2  ;;  %v525_v9 = vld [vmem:[#allocation2] sm:$0xff]   ;;  %s609_s18 = smov [#allocation7]  }
  0x2a   :  { %486 = vmatprep.subr.bf16.mxu0 %v606_v0  ;;  %v526_v10 = vld [vmem:[%s740_s3] sm:$0xff]  }
  0x2b   :  { %v447_v12 = vld [vmem:[%s742_s5] ss:$0 sm:$0xff] }
  0x2c   :  { %477 = vmatmul.mubr.msk.bf16.vlgmr.msra.gmra.mrb[0].mxu0 %vm69_vm2, %v524_v3  ;;  %v453_v29 = vld [vmem:[%s743_s6] ss:$0 sm:$0xff] }
  0x2d   :  { %490 = vmatprep.mubr.msk.bf16.mxu0 %vm607_vm0, %v606_v0  ;;  %487 = vmatpush3.bf16.msra.mxu0 %v526_v10  ;;  %v458_v44 = vld [vmem:[%s744_s7] ss:$0 sm:$0xff]  ;;  %s432_s7 = sshll.u32 %s609_s18, 4  ;;  %s433_s7 = int_to_ptr.vmem [resolvable:$true] %s432_s7 }
  0x2e   :  { %488 = vmatprep.subr.bf16.mxu0 %v606_v0  ;;  %p579_p3 = scmp.lt.s32.totalorder %s433_s7, %s433_s7 }
  0x31   :  { %489 = vmatpush3.bf16.msra.mxu0 %v527_v11 }
  0x32   :  { %500 = vmatprep.subr.bf16.mxu0 %v606_v0 }
  0xff   :  { %v111_v4 = vpop.f32.mrb[0].mxu0 }
 0x100   :  { %v478_v5 = vpop.f32.mrb[1].mxu0 }
 0x101   :  { %v114_v6 = vpop.f32.mrb[2].mxu0 }
 0x102   :  { %v118_v7 = vpack.c.bf16 %v114_v6, %v111_v4  ;;  %v479_v8 = vpop.f32.mrb[3].mxu0 }
 0x104   :  { %481 = vmatpush3.bf16.msra.mxu1 %v118_v7 }
 0x105   :  { %494 = vmatprep.subr.bf16.mxu1 %v606_v0 }
 0x107   :  { %483 = vmatmul.mubr.msk.bf16.vlgmr.msra.gmra.mrb[0].mxu1 %vm131_vm3, %v525_v9 }
 0x108   :  { %496 = vmatprep.mubr.msk.bf16.mxu1 %vm607_vm0, %v606_v0 }
 0x1da   :  { %v169_v13 = vpop.f32.mrb[0].mxu1 }
 0x1db   :  { %v170_v14 = vadd.f32 %v447_v12, %v169_v13  ;;  %v484_v15 = vpop.f32.mrb[1].mxu1 }
 0x1dc   :  { %v172_v16 = vpop.f32.mrb[2].mxu1 }
 0x1dd   :  { %v705_v17 = vadd.f32 %v447_v12, %v172_v16  ;;  %v485_v18 = vpop.f32.mrb[3].mxu1  ;;  %v176_v19 = vmax.f32 %v170_v14, 0.0 }
 0x1df   :  { %v177_v20 = vmax.f32 %v705_v17, 0.0 }
 0x1e1   :  { %v178_v21 = vpack.c.bf16 %v177_v20, %v176_v19 }
 0x1e3   :  { %491 = vmatmul.mubr.msk.bf16.vlgmr.msra.gmra.mrb[4].mxu0 %vm195_vm4, %v178_v21 }
 0x1e4   :  { %504 = vmatprep.mubr.msk.bf16.mxu0 %vm607_vm0, %v606_v0  ;;  %501 = vmatpush3.bf16.msra.mxu0 %v528_v27 }
 0x1e5   :  { %502 = vmatprep.subr.bf16.mxu0 %v606_v0 }
 0x1e8   :  { %503 = vmatpush3.bf16.msra.mxu0 %v529_v28 }
 0x2b6   :  { %v233_v22 = vpop.f32.mrb[4].mxu0 }
 0x2b7   :  { %v492_v23 = vpop.f32.mrb[5].mxu0 }
 0x2b8   :  { %v236_v24 = vpop.f32.mrb[6].mxu0 }
 0x2b9   :  { %v240_v25 = vpack.c.bf16 %v236_v24, %v233_v22  ;;  %v493_v26 = vpop.f32.mrb[7].mxu0 }
 0x2bb   :  { %495 = vmatpush3.bf16.msra.mxu1 %v240_v25 }
 0x2bc   :  { %508 = vmatprep.subr.bf16.mxu1 %v606_v0 }
 0x2be   :  { %497 = vmatmul.mubr.msk.bf16.vlgmr.msra.gmra.mrb[4].mxu1 %vm131_vm3, %v525_v9 }
 0x2bf   :  { %510 = vmatprep.mubr.msk.bf16.mxu1 %vm607_vm0, %v606_v0 }
 0x391   :  { %v282_v30 = vpop.f32.mrb[4].mxu1 }
 0x392   :  { %v283_v31 = vadd.f32 %v453_v29, %v282_v30  ;;  %v498_v32 = vpop.f32.mrb[5].mxu1 }
 0x393   :  { %v285_v33 = vpop.f32.mrb[6].mxu1 }
 0x394   :  { %v286_v34 = vadd.f32 %v453_v29, %v285_v33  ;;  %403 = vrot.lane.b32.xlu0 %v283_v31, %s608_s16  ;;  %v499_v35 = vpop.f32.mrb[7].mxu1  ;;  %v289_v36 = vmax.f32 %v283_v31, 0.0 }
 0x396   :  { %v290_v37 = vmax.f32 %v286_v34, 0.0 }
 0x398   :  { %v291_v38 = vpack.c.bf16 %v290_v37, %v289_v36  ;;  %405 = vrot.lane.b32.xlu0 %v286_v34, %s608_s16 }
 0x39a   :  { %505 = vmatmul.mubr.msk.bf16.vlgmr.msra.gmra.mrb[8].mxu0 %vm195_vm4, %v291_v38 }
 0x406   :  { %v404_v51 = vpop.permute.xlu0 %403 }
 0x407   :  { %v417_v52 = vsel %vm195_vm4, %v170_v14, %v404_v51 }
 0x40a   :  { %v406_v54 = vpop.permute.xlu0 %405 }
 0x40b   :  { %v418_v57 = vsel %vm195_vm4, %v705_v17, %v406_v54 }
 0x46d   :  { %v345_v39 = vpop.f32.mrb[8].mxu0 }
 0x46e   :  { %v506_v40 = vpop.f32.mrb[9].mxu0 }
 0x46f   :  { %v348_v41 = vpop.f32.mrb[10].mxu0 }
 0x470   :  { %v352_v42 = vpack.c.bf16 %v348_v41, %v345_v39  ;;  %v507_v43 = vpop.f32.mrb[11].mxu0 }
 0x472   :  { %509 = vmatpush3.bf16.msra.mxu1 %v352_v42 }
 0x475   :  { %511 = vmatmul.mubr.msk.bf16.vlgmr.msra.gmra.mrb[8].mxu1 %vm131_vm3, %v525_v9 }
 0x548   :  { %v394_v45 = vpop.f32.mrb[8].mxu1 }
 0x549   :  { %v395_v46 = vadd.f32 %v458_v44, %v394_v45  ;;  %v512_v47 = vpop.f32.mrb[9].mxu1 }
 0x54a   :  { %v397_v48 = vpop.f32.mrb[10].mxu1 }
 0x54b   :  { %411 = vrot.lane.b32.xlu1 %v395_v46, %s603_s15  ;;  %v513_v49 = vpop.f32.mrb[11].mxu1  ;;  %v398_v50 = vadd.f32 %v458_v44, %v397_v48 }
 0x54f   :  { %413 = vrot.lane.b32.xlu1 %v398_v50, %s603_s15  ;;  %s574_s15 = scalar_lea.vmem %s433_s7, 256 }
 0x550   :  { %p575_p2 = scmp.ne.s32.totalorder %s433_s7, %s574_s15  ;;  %p580_p4 = scmp.lt.s32.totalorder %s574_s15, %s574_s15 }
 0x552   :  { %p581_p5 = por %p580_p4, %p579_p3 }
 0x554   :  { %p582_p6 = pnand %p581_p5, %p575_p2 }
 0x5bd   :  { %v412_v53 = vpop.permute.xlu1 %411 }
 0x5be   :  { %v420_v55 = vsel %vm419_vm5, %v417_v52, %v412_v53 }
 0x5bf   :  { %v423_v56 = vsel %vm422_vm6, %v420_v55, 0.0 }
 0x5c0   :  { %425 = vst [vmem:[#allocation7] sm:$0xff] %v423_v56 }
 0x5c1   :  { %v414_v58 = vpop.permute.xlu1 %413 }
 0x5c2   :  { %v421_v59 = vsel %vm419_vm5, %v418_v57, %v414_v58 }
 0x5c3   :  { %v424_v60 = vsel %vm422_vm6, %v421_v59, 0.0 }
 0x5c4   :  { %426 = vst [vmem:[#allocation7 + $0x8] sm:$0xff] %v424_v60 }
 0x5c5   :  { %585 = shalt.err (!%p582_p6)
}
 0x5c6   :  { %s586_s21 = scalar_lea.hbm %s745_s8, 256 }
 0x5c7   :  { %p587_p7 = scmp.ne.s32.totalorder %s745_s8, %s586_s21  ;;  %p590_p8 = scmp.lt.u32.totalorder %s586_s21, %s745_s8 }
 0x5c9   :  { %p592_p9 = pnand %p590_p8, %p587_p7 }
 0x5cb   :  { %595 = shalt.err (!%p592_p9)
}
 0x5cc   :  { %s610_s26 = smov 128   ;;  %s611_s27 = smov 8  }
 0x5cd   :  { %438 = dma.vmem_to_hbm [thread:$0]  %s433_s7, 256, %s745_s8, [#allocation4], %s610_s26, %s610_s26, %s611_s27  }
 0x5ce   :  { %600 = dma.done.wait [#allocation4], 256  }
 0x5cf   :  { %601 = vsyncadd [#allocation4], 4294967040 }
 0x5d0   :  { %442 = vsyncpa [#allocation3], 1 }
 0x5d1   :  { %443 = vsyncpa [#allocation6], 1 }
 0x5d2   :  { %444 = vsyncpa [#allocation4], 1 }

</bundles_post_ra>
